<compile_context>
chip_gen: v7x
topology: tpu7x:2x2x1
jax: 0.10.0
libtpu: 0.0.40
codegen_flags: <defaults>
</compile_context>

<pallas_src>
import functools

import jax
import jax.numpy as jnp
from jax.experimental import pallas as pl
from jax.experimental.pallas import tpu as pltpu

PYRAMID_WEIGHT = (1.0 / 3.0, 2.0 / 3.0, 1.0, 1.0, 1.0)

_LANES = 1024     # lane-major width of the flattened pixel slab (multiple of 128)
_TR_MAX = 256     # max rows per tile -> 256*1024*4 B = 1 MiB per operand per buffer
_NCORES = 2       # leading "parallel" grid axis (2 TCs on v7x; no-op on v5e/v6e)


def _round_up(x, m):
    return (x + m - 1) // m * m


def _cdiv(a, b):
    return -(-a // b)


def _disparity_loss_kernel(*refs, weights, tr, lanes):
    """One (tr, lanes) pixel tile: masked SmoothL1 (beta=1), weighted over levels.

    refs = (gt_ref, pred_ref_0 .. pred_ref_{L-1}, sum_ref, cnt_ref)
      gt_ref / pred_ref_*: (tr, lanes) f32 VMEM tiles
      sum_ref / cnt_ref:   (1, 8, lanes) f32 VMEM accumulators, resident across
                           the inner "arbitrary" grid axis (per-core partials).
    """
    L = len(weights)
    gt_ref = refs[0]
    pred_refs = refs[1:1 + L]
    sum_ref, cnt_ref = refs[1 + L], refs[2 + L]

    @pl.when(pl.program_id(1) == 0)
    def _():
        sum_ref[...] = jnp.zeros_like(sum_ref)
        cnt_ref[...] = jnp.zeros_like(cnt_ref)

    gt = gt_ref[...]                          # (tr, lanes)
    mask = gt > 0.0                           # padded pixels have gt==0 -> excluded

    # Weighted SmoothL1 accumulated per-pixel (pure VPU, hidden under the DMAs).
    wsum = jnp.zeros_like(gt)
    for w, p_ref in zip(weights, pred_refs):  # L is small & static -> unrolled
        diff = p_ref[...] - gt
        ad = jnp.abs(diff)
        sl1 = jnp.where(ad < 1.0, 0.5 * diff * diff, ad - 0.5)  # SmoothL1, beta=1
        wsum = wsum + jnp.float32(w) * sl1
    wsum = jnp.where(mask, wsum, 0.0)

    # Sublane-group reduction (tr, lanes) -> (8, lanes): elementwise vreg adds only;
    # the single cross-lane reduction is deferred to the (tiny) JAX epilogue.
    red_sum = wsum.reshape(tr // 8, 8, lanes).sum(axis=0)
    red_cnt = mask.astype(jnp.float32).reshape(tr // 8, 8, lanes).sum(axis=0)
    sum_ref[...] += red_sum[None]
    cnt_ref[...] += red_cnt[None]


def disparity_loss(x, disp_loss_cfg):
    """JAX/Pallas equivalent of DisparityLoss.forward (non-distributed path)."""
    pred_disparity_pyramid, gt_disparity, left_img, right_img = x
    del left_img, right_img  # only needed by the warp-loss branch
    # TODO(synk): disp_loss_cfg['use_warp_loss'] path needs disp_warp (grid_sample
    #             based warping), which is not defined in the module source.
    assert not disp_loss_cfg.get('use_warp_loss', False)
    # TODO(synk): is_distributed (all_gather of valid-pixel counts) path not implemented.

    B, H, W = gt_disparity.shape
    L = len(pred_disparity_pyramid)
    weights = PYRAMID_WEIGHT[:L]
    N = B * H * W

    # ---- tiling / padding geometry ------------------------------------------
    rows = _cdiv(N, _LANES)
    tr = min(_TR_MAX, _round_up(_cdiv(rows, _NCORES), 8))     # rows per tile (mult of 8)
    rows_padded = _round_up(rows, _NCORES * tr)
    steps_per_core = rows_padded // (_NCORES * tr)
    n_padded = rows_padded * _LANES

    def to_slab(a):
        flat = a.astype(jnp.float32).reshape(-1)
        if n_padded != N:
            flat = jnp.pad(flat, (0, n_padded - N))           # gt padding==0 -> masked out
        return flat.reshape(rows_padded, _LANES)

    # ---- glue (plain JAX): bilinear upsample (align_corners=False) + rescale --
    # TODO(synk): fuse the bilinear upsample into the kernel to avoid materializing
    #             L full-resolution f32 maps in HBM (3-5x traffic reduction).
    slabs = []
    for p in pred_disparity_pyramid:
        p = p.astype(jnp.float32)
        if p.shape[-1] != W:
            scale = float(W) / float(p.shape[-1])
            p = jax.image.resize(p, (B, H, W), method='bilinear') * scale
        slabs.append(to_slab(p))
    gt_slab = to_slab(gt_disparity)

    # ---- pallas call ----------------------------------------------------------
    kernel = functools.partial(_disparity_loss_kernel,
                               weights=weights, tr=tr, lanes=_LANES)

    in_specs = [
        pl.BlockSpec((tr, _LANES), lambda c, i, s=steps_per_core: (c * s + i, 0))
        for _ in range(L + 1)
    ]
    out_specs = (pl.BlockSpec((1, 8, _LANES), lambda c, i: (c, 0, 0)),
                 pl.BlockSpec((1, 8, _LANES), lambda c, i: (c, 0, 0)))
    out_shape = (jax.ShapeDtypeStruct((_NCORES, 8, _LANES), jnp.float32),
                 jax.ShapeDtypeStruct((_NCORES, 8, _LANES), jnp.float32))

    cost = pl.CostEstimate(
        flops=8 * L * n_padded,
        transcendentals=0,
        bytes_accessed=(L + 1) * n_padded * 4 + 2 * _NCORES * 8 * _LANES * 4,
    )

    sums, cnts = pl.pallas_call(
        kernel,
        out_shape=out_shape,
        grid_spec=pltpu.PrefetchScalarGridSpec(
            num_scalar_prefetch=0,
            grid=(_NCORES, steps_per_core),
            in_specs=in_specs,
            out_specs=out_specs,
        ),
        compiler_params=pltpu.CompilerParams(
            dimension_semantics=("parallel", "arbitrary"),
            vmem_limit_bytes=32 * 1024 * 1024,
        ),
        cost_estimate=cost,
    )(gt_slab, *slabs)

    # Tiny epilogue: one cross-lane reduction + one divide.
    # sum_l w_l * mean_over_mask(sl1_l) == (sum of weighted masked sl1) / count.
    total = jnp.sum(sums)
    count = jnp.sum(cnts)      # NOTE: count==0 -> NaN, matching PyTorch's empty-mask mean().
    loss = total / count * jnp.float32(disp_loss_cfg['ls_loss_weight'])
    return {'l1_loss': loss}


def _reference(x, disp_loss_cfg):
    """Pure-JAX reference mirroring the PyTorch forward."""
    pred_pyramid, gt, _, _ = x
    B, H, W = gt.shape
    gt = gt.astype(jnp.float32)
    mask = gt > 0
    total = 0.0
    for idx, p in enumerate(pred_pyramid):
        p = p.astype(jnp.float32)
        if p.shape[-1] != W:
            p = jax.image.resize(p, (B, H, W), method='bilinear') * (W / p.shape[-1])
        diff = p - gt
        ad = jnp.abs(diff)
        sl1 = jnp.where(ad < 1.0, 0.5 * diff * diff, ad - 0.5)
        total = total + PYRAMID_WEIGHT[idx] * (
            jnp.sum(jnp.where(mask, sl1, 0.0)) / jnp.sum(mask)
        )
    return total * disp_loss_cfg['ls_loss_weight']


if __name__ == "__main__":
    key = jax.random.PRNGKey(0)
    B, H, W = 2, 16, 16
    C = 3

    k_gt, k_m, k_p0, k_p1, k_p2, k_l, k_r = jax.random.split(key, 7)

    # Ground-truth disparity with ~30% invalid (zero) pixels to exercise the mask.
    gt = jax.random.uniform(k_gt, (B, H, W), jnp.float32, 0.0, 8.0)
    valid = jax.random.uniform(k_m, (B, H, W)) > 0.3
    gt = jnp.where(valid, gt, 0.0)

    # 3-level prediction pyramid: full, half, quarter resolution.
    pred_pyramid = [
        jax.random.uniform(k_p0, (B, H, W), jnp.float32, 0.0, 8.0),
        jax.random.uniform(k_p1, (B, H // 2, W // 2), jnp.float32, 0.0, 4.0),
        jax.random.uniform(k_p2, (B, H // 4, W // 4), jnp.float32, 0.0, 2.0),
    ]

    # NCHW images (unused: warp loss disabled), kept to mirror the input tuple.
    left_img = jax.random.uniform(k_l, (B, C, H, W), jnp.float32)
    right_img = jax.random.uniform(k_r, (B, C, H, W), jnp.float32)

    disp_loss_cfg = {
        'use_warp_loss': False,
        'ls_loss_weight': 1.0,
        'warp_loss_weight': 0.1,
    }

    x = (pred_pyramid, gt, left_img, right_img)

    out = disparity_loss(x, disp_loss_cfg)
    l1 = jax.block_until_ready(out['l1_loss'])

    ref = jax.block_until_ready(_reference(x, disp_loss_cfg))
    assert jnp.allclose(l1, ref, rtol=1e-5, atol=1e-5), (l1, ref)

    print("KERNEL_OK")
</pallas_src>

<mosaic_0001>
module attributes {stable_mosaic.version = 11 : i64} {
  func.func @_disparity_loss_kernel(%arg0: i32, %arg1: i32, %arg2: memref<8x1024xf32, #tpu.memory_space<vmem>>, %arg3: memref<8x1024xf32, #tpu.memory_space<vmem>>, %arg4: memref<8x1024xf32, #tpu.memory_space<vmem>>, %arg5: memref<8x1024xf32, #tpu.memory_space<vmem>>, %arg6: memref<1x8x1024xf32, #tpu.memory_space<vmem>>, %arg7: memref<1x8x1024xf32, #tpu.memory_space<vmem>>) attributes {dimension_semantics = [#tpu.dimension_semantics<parallel>, #tpu.dimension_semantics<arbitrary>], iteration_bounds = array<i64: 2, 1>, scalar_prefetch = 0 : i64, scratch_operands = 0 : i64, tpu.core_type = #tpu.core_type<tc>, window_params = [{transform_indices = @transform_0, window_bounds = array<i64: 8, 1024>}, {transform_indices = @transform_1, window_bounds = array<i64: 8, 1024>}, {transform_indices = @transform_2, window_bounds = array<i64: 8, 1024>}, {transform_indices = @transform_3, window_bounds = array<i64: 8, 1024>}, {transform_indices = @transform_4, window_bounds = array<i64: 1, 8, 1024>}, {transform_indices = @transform_5, window_bounds = array<i64: 1, 8, 1024>}]} {
    %c0_i32 = arith.constant 0 : i32
    %0 = arith.cmpi eq, %arg1, %c0_i32 : i32
    %1 = arith.extui %0 : i1 to i32
    %c0_i32_0 = arith.constant 0 : i32
    %2 = arith.cmpi ne, %1, %c0_i32_0 : i32
    scf.if %2 {
      %cst_36 = arith.constant 0.000000e+00 : f32
      %65 = vector.broadcast %cst_36 : f32 to vector<1x8x1024xf32>
      %c0_37 = arith.constant 0 : index
      %c0_38 = arith.constant 0 : index
      %c0_39 = arith.constant 0 : index
      %66 = vector.load %arg6[%c0_37, %c0_38, %c0_39] : memref<1x8x1024xf32, #tpu.memory_space<vmem>>, vector<1x8x1024xf32>
      tpu.vector_store %arg6[%c0_37, %c0_38, %c0_39], %65 {strides = array<i32>} : memref<1x8x1024xf32, #tpu.memory_space<vmem>>, vector<1x8x1024xf32>,
      %cst_40 = arith.constant 0.000000e+00 : f32
      %67 = vector.broadcast %cst_40 : f32 to vector<1x8x1024xf32>
      %c0_41 = arith.constant 0 : index
      %c0_42 = arith.constant 0 : index
      %c0_43 = arith.constant 0 : index
      %68 = vector.load %arg7[%c0_41, %c0_42, %c0_43] : memref<1x8x1024xf32, #tpu.memory_space<vmem>>, vector<1x8x1024xf32>
      tpu.vector_store %arg7[%c0_41, %c0_42, %c0_43], %67 {strides = array<i32>} : memref<1x8x1024xf32, #tpu.memory_space<vmem>>, vector<1x8x1024xf32>,
    } else {
    }
    %c0 = arith.constant 0 : index
    %c0_1 = arith.constant 0 : index
    %3 = vector.load %arg2[%c0, %c0_1] : memref<8x1024xf32, #tpu.memory_space<vmem>>, vector<8x1024xf32>
    %cst = arith.constant 0.000000e+00 : f32
    %4 = vector.broadcast %cst : f32 to vector<8x1024xf32>
    %5 = arith.cmpf ogt, %3, %4 : vector<8x1024xf32>
    %cst_2 = arith.constant 0.000000e+00 : f32
    %6 = vector.broadcast %cst_2 : f32 to vector<8x1024xf32>
    %c0_3 = arith.constant 0 : index
    %c0_4 = arith.constant 0 : index
    %7 = vector.load %arg3[%c0_3, %c0_4] : memref<8x1024xf32, #tpu.memory_space<vmem>>, vector<8x1024xf32>
    %8 = arith.subf %7, %3 : vector<8x1024xf32>
    %9 = math.absf %8 : vector<8x1024xf32>
    %cst_5 = arith.constant 1.000000e+00 : f32
    %10 = vector.broadcast %cst_5 : f32 to vector<8x1024xf32>
    %11 = arith.cmpf olt, %9, %10 : vector<8x1024xf32>
    %cst_6 = arith.constant 5.000000e-01 : f32
    %12 = vector.broadcast %cst_6 : f32 to vector<8x1024xf32>
    %13 = arith.mulf %12, %8 : vector<8x1024xf32>
    %14 = arith.mulf %13, %8 : vector<8x1024xf32>
    %cst_7 = arith.constant 5.000000e-01 : f32
    %15 = vector.broadcast %cst_7 : f32 to vector<8x1024xf32>
    %16 = arith.subf %9, %15 : vector<8x1024xf32>
    %17 = arith.select %11, %14, %16 : vector<8x1024xi1>, vector<8x1024xf32>
    %cst_8 = arith.constant 0.333333343 : f32
    %18 = vector.broadcast %cst_8 : f32 to vector<8x1024xf32>
    %19 = arith.mulf %18, %17 : vector<8x1024xf32>
    %20 = arith.addf %6, %19 : vector<8x1024xf32>
    %c0_9 = arith.constant 0 : index
    %c0_10 = arith.constant 0 : index
    %21 = vector.load %arg4[%c0_9, %c0_10] : memref<8x1024xf32, #tpu.memory_space<vmem>>, vector<8x1024xf32>
    %22 = arith.subf %21, %3 : vector<8x1024xf32>
    %23 = math.absf %22 : vector<8x1024xf32>
    %cst_11 = arith.constant 1.000000e+00 : f32
    %24 = vector.broadcast %cst_11 : f32 to vector<8x1024xf32>
    %25 = arith.cmpf olt, %23, %24 : vector<8x1024xf32>
    %cst_12 = arith.constant 5.000000e-01 : f32
    %26 = vector.broadcast %cst_12 : f32 to vector<8x1024xf32>
    %27 = arith.mulf %26, %22 : vector<8x1024xf32>
    %28 = arith.mulf %27, %22 : vector<8x1024xf32>
    %cst_13 = arith.constant 5.000000e-01 : f32
    %29 = vector.broadcast %cst_13 : f32 to vector<8x1024xf32>
    %30 = arith.subf %23, %29 : vector<8x1024xf32>
    %31 = arith.select %25, %28, %30 : vector<8x1024xi1>, vector<8x1024xf32>
    %cst_14 = arith.constant 0.666666686 : f32
    %32 = vector.broadcast %cst_14 : f32 to vector<8x1024xf32>
    %33 = arith.mulf %32, %31 : vector<8x1024xf32>
    %34 = arith.addf %20, %33 : vector<8x1024xf32>
    %c0_15 = arith.constant 0 : index
    %c0_16 = arith.constant 0 : index
    %35 = vector.load %arg5[%c0_15, %c0_16] : memref<8x1024xf32, #tpu.memory_space<vmem>>, vector<8x1024xf32>
    %36 = arith.subf %35, %3 : vector<8x1024xf32>
    %37 = math.absf %36 : vector<8x1024xf32>
    %cst_17 = arith.constant 1.000000e+00 : f32
    %38 = vector.broadcast %cst_17 : f32 to vector<8x1024xf32>
    %39 = arith.cmpf olt, %37, %38 : vector<8x1024xf32>
    %cst_18 = arith.constant 5.000000e-01 : f32
    %40 = vector.broadcast %cst_18 : f32 to vector<8x1024xf32>
    %41 = arith.mulf %40, %36 : vector<8x1024xf32>
    %42 = arith.mulf %41, %36 : vector<8x1024xf32>
    %cst_19 = arith.constant 5.000000e-01 : f32
    %43 = vector.broadcast %cst_19 : f32 to vector<8x1024xf32>
    %44 = arith.subf %37, %43 : vector<8x1024xf32>
    %45 = arith.select %39, %42, %44 : vector<8x1024xi1>, vector<8x1024xf32>
    %cst_20 = arith.constant 1.000000e+00 : f32
    %46 = vector.broadcast %cst_20 : f32 to vector<8x1024xf32>
    %47 = arith.mulf %46, %45 : vector<8x1024xf32>
    %48 = arith.addf %34, %47 : vector<8x1024xf32>
    %cst_21 = arith.constant 0.000000e+00 : f32
    %49 = vector.broadcast %cst_21 : f32 to vector<8x1024xf32>
    %50 = arith.select %5, %48, %49 : vector<8x1024xi1>, vector<8x1024xf32>
    %51 = vector.shape_cast %50 : vector<8x1024xf32> to vector<1x8x1024xf32>
    %cst_22 = arith.constant dense<0.000000e+00> : vector<8x1024xf32>
    %52 = vector.multi_reduction <add>, %51, %cst_22 [0] : vector<1x8x1024xf32> to vector<8x1024xf32>
    %53 = arith.extui %5 : vector<8x1024xi1> to vector<8x1024xi32>
    %54 = arith.sitofp %53 : vector<8x1024xi32> to vector<8x1024xf32>
    %55 = vector.shape_cast %54 : vector<8x1024xf32> to vector<1x8x1024xf32>
    %cst_23 = arith.constant dense<0.000000e+00> : vector<8x1024xf32>
    %56 = vector.multi_reduction <add>, %55, %cst_23 [0] : vector<1x8x1024xf32> to vector<8x1024xf32>
    %c0_24 = arith.constant 0 : index
    %c0_25 = arith.constant 0 : index
    %c0_26 = arith.constant 0 : index
    %57 = vector.load %arg6[%c0_24, %c0_25, %c0_26] : memref<1x8x1024xf32, #tpu.memory_space<vmem>>, vector<1x8x1024xf32>
    %58 = vector.shape_cast %52 : vector<8x1024xf32> to vector<1x8x1024xf32>
    %59 = arith.addf %57, %58 : vector<1x8x1024xf32>
    %c0_27 = arith.constant 0 : index
    %c0_28 = arith.constant 0 : index
    %c0_29 = arith.constant 0 : index
    %60 = vector.load %arg6[%c0_27, %c0_28, %c0_29] : memref<1x8x1024xf32, #tpu.memory_space<vmem>>, vector<1x8x1024xf32>
    tpu.vector_store %arg6[%c0_27, %c0_28, %c0_29], %59 {strides = array<i32>} : memref<1x8x1024xf32, #tpu.memory_space<vmem>>, vector<1x8x1024xf32>,
    %c0_30 = arith.constant 0 : index
    %c0_31 = arith.constant 0 : index
    %c0_32 = arith.constant 0 : index
    %61 = vector.load %arg7[%c0_30, %c0_31, %c0_32] : memref<1x8x1024xf32, #tpu.memory_space<vmem>>, vector<1x8x1024xf32>
    %62 = vector.shape_cast %56 : vector<8x1024xf32> to vector<1x8x1024xf32>
    %63 = arith.addf %61, %62 : vector<1x8x1024xf32>
    %c0_33 = arith.constant 0 : index
    %c0_34 = arith.constant 0 : index
    %c0_35 = arith.constant 0 : index
    %64 = vector.load %arg7[%c0_33, %c0_34, %c0_35] : memref<1x8x1024xf32, #tpu.memory_space<vmem>>, vector<1x8x1024xf32>
    tpu.vector_store %arg7[%c0_33, %c0_34, %c0_35], %63 {strides = array<i32>} : memref<1x8x1024xf32, #tpu.memory_space<vmem>>, vector<1x8x1024xf32>,
    return
  }
  func.func @transform_0(%arg0: i32, %arg1: i32) -> (i32, i32) {
    %c1_i32 = arith.constant 1 : i32
    %0 = arith.muli %arg0, %c1_i32 : i32
    %1 = arith.addi %0, %arg1 : i32
    %c0_i32 = arith.constant 0 : i32
    %c0_i32_0 = arith.constant 0 : i32
    return %1, %c0_i32 : i32, i32
  }
  func.func @transform_1(%arg0: i32, %arg1: i32) -> (i32, i32) {
    %c1_i32 = arith.constant 1 : i32
    %0 = arith.muli %arg0, %c1_i32 : i32
    %1 = arith.addi %0, %arg1 : i32
    %c0_i32 = arith.constant 0 : i32
    %c0_i32_0 = arith.constant 0 : i32
    return %1, %c0_i32 : i32, i32
  }
  func.func @transform_2(%arg0: i32, %arg1: i32) -> (i32, i32) {
    %c1_i32 = arith.constant 1 : i32
    %0 = arith.muli %arg0, %c1_i32 : i32
    %1 = arith.addi %0, %arg1 : i32
    %c0_i32 = arith.constant 0 : i32
    %c0_i32_0 = arith.constant 0 : i32
    return %1, %c0_i32 : i32, i32
  }
  func.func @transform_3(%arg0: i32, %arg1: i32) -> (i32, i32) {
    %c1_i32 = arith.constant 1 : i32
    %0 = arith.muli %arg0, %c1_i32 : i32
    %1 = arith.addi %0, %arg1 : i32
    %c0_i32 = arith.constant 0 : i32
    %c0_i32_0 = arith.constant 0 : i32
    return %1, %c0_i32 : i32, i32
  }
  func.func @transform_4(%arg0: i32, %arg1: i32) -> (i32, i32, i32) {
    %c0_i32 = arith.constant 0 : i32
    %c0_i32_0 = arith.constant 0 : i32
    %c0_i32_1 = arith.constant 0 : i32
    return %arg0, %c0_i32, %c0_i32_0 : i32, i32, i32
  }
  func.func @transform_5(%arg0: i32, %arg1: i32) -> (i32, i32, i32) {
    %c0_i32 = arith.constant 0 : i32
    %c0_i32_0 = arith.constant 0 : i32
    %c0_i32_1 = arith.constant 0 : i32
    return %arg0, %c0_i32, %c0_i32_0 : i32, i32, i32
  }
}

</mosaic_0001>

<bundles_post_ra>
// kernel: tpu_custom_call.1
= control target key start
LH: loop header
LB: loop body
LE: loop exit
PB: predicated region body
PF: predicated region fallthrough
CT: control target
= control target key end

     0   :  { %s1957_s0 = inlined_call_operand.hbm [shape: f32[16,1024], index: 0, kind: input, shape index: {}]   ;;  %s1958_s1 = inlined_call_operand.hbm [shape: f32[16,1024], index: 1, kind: input, shape index: {}]   ;;  %s1959_s2 = inlined_call_operand.hbm [shape: f32[16,1024], index: 2, kind: input, shape index: {}]   ;;  %s1960_s3 = inlined_call_operand.hbm [shape: f32[16,1024], index: 3, kind: input, shape index: {}]   ;;  %s1961_s4 = inlined_call_operand.hbm [shape: f32[2,8,1024], index: 4, kind: output, shape index: {0}]   ;;  %s1962_s5 = inlined_call_operand.hbm [shape: f32[2,8,1024], index: 5, kind: output, shape index: {1}]  }
   0x1   :  { %1973 = sst [smem:[#allocation24_spill]] %s1958_s1 }
   0x2   :  { %11 = vsyncpa [#allocation3], 0 }
   0x3   :  { %13 = vsyncpa [#allocation3 + $0x1], 0 }
   0x4   :  { %14 = vsyncpa [#allocation6], 0 }
   0x5   :  { %16 = vsyncpa [#allocation6 + $0x1], 0 }
   0x6   :  { %17 = vsyncpa [#allocation9], 0 }
   0x7   :  { %19 = vsyncpa [#allocation9 + $0x1], 0 }
   0x8   :  { %20 = vsyncpa [#allocation4], 0 }
   0x9   :  { %22 = vsyncpa [#allocation4 + $0x1], 0 }
   0xa   :  { %23 = vsyncpa [#allocation12], 0 }
   0xb   :  { %25 = vsyncpa [#allocation12 + $0x1], 0  ;;  %s1394_s18 = smov 0   ;;  %s1396_s19 = smov 0  }
   0xc   :  { %s1398_s20 = smov 0   ;;  %s1400_s21 = smov 0  }
   0xd   :  { %s1402_s22 = smov 0   ;;  %s1404_s23 = smov 0  }
   0xe LB: > { %1974 = sst [smem:[#allocation18_spill]] %s1343_s20  ;;  %s1425_s24 = sadd.s32 4294967295, %s1355_s23   ;;  %s1355_s23 = sphi %s1404_s23, %s31_s23   ;;  %s1351_s22 = sphi %s1402_s22, %s2034_s22   ;;  %s1347_s21 = sphi %s1400_s21, %s2033_s21   ;;  %s1343_s20 = sphi %s1398_s20, %s2032_s20   ;;  %s1339_s19 = sphi %s1396_s19, %s2036_s19   ;;  %s1335_s18 = sphi %s1394_s18, %s2035_s18  }
   0xf   : > { %1975 = sst [smem:[#allocation19_spill]] %s1351_s22  ;;  %s962_s25 = sadd.s32 4294967294, %s1355_s23  }
  0x10   : > { %1976 = sst [smem:[#allocation20_spill]] %s1355_s23  ;;  %s43_s26 = sadd.s32 1, %s1351_s22 }
  0x11   : > { %s52_s27 = sadd.s32 1, %s1343_s20  ;;  %p45_p0 = scmp.ge.s32.totalorder %s43_s26, 2 }
  0x12   : > { %p59_p1 = scmp.ne.s32.totalorder %s1343_s20, %s1339_s19  ;;  %p60_p2 = scmp.eq.s32.totalorder %s1355_s23, 0 }
  0x13   : > { %p65_p3 = scmp.ne.s32.totalorder %s1339_s19, %s1335_s18  ;;  %s2038_s26 = smov (%p45_p0, %s43_s26), 0 }
  0x14   : > { %1977 = sst [smem:[#allocation21_spill]] %s2038_s26  ;;  %p1437_p4 = por %p60_p2, %p59_p1 }
  0x15   : > { %p66_p5 = scmp.eq.s32.totalorder %s1425_s24, 0  ;;  %s49_s29 = ssub.s32 %s1351_s22, %s2038_s26 }
  0x16   : > { %p173_p6 = scmp.eq.s32.totalorder %s1425_s24, 1  ;;  %p50_p7 = scmp.eq.s32.totalorder %s49_s29, 0 }
  0x17   : > { %p1445_p8 = por %p66_p5, %p65_p3  ;;  %p179_p10 = scmp.eq.s32.totalorder %s962_s25, 1 }
  0x18   : > { %p1449_p9 = por %p173_p6, %p59_p1  ;;  %p1062_p13 = scmp.lt.s32.totalorder %s1355_s23, 2 }
  0x19   : > { %s1979_s30 = scalar_select %p1445_p8, 1, 0 }
  0x1a   : > { %s1980_s6 = scalar_select %p1449_p9, 1, 0 }
  0x1b   : > { %s1454_s7 = scalar_select %p50_p7, %s1343_s20, %s52_s27  }
  0x1c   : > { %p1456_p11 = por %p179_p10, %p65_p3  ;;  %s1463_s9 = sand.u32 1, %s1343_s20  }
  0x1d   : > { %1981 = sst [smem:[#allocation22_spill]] %s1454_s7  ;;  %s1466_s10 = sshll.u32 %s1463_s9, 6 }
  0x1e   : > { %s1982_s8 = scalar_select %p1456_p11, 1, 0 }
  0x1f   : > { %s1469_s11 = sshll.u32 %s1351_s22, 10  ;;  %p1473_p0 = pnand %p1062_p13, %p1437_p4 }
  0x20   : > { %1983 = sst [smem:[#allocation23_spill]] %s1982_s8  ;;  %s245_s13 = sand.u32 1, %s1355_s23  }
  0x21   : > { %s1984_s12 = scalar_select %p1473_p0, 1, 0 }
  0x22   : > { %s1985_s1 = sld [smem:[#allocation24_spill]]  ;;  %s249_s17 = scalar_lea.vmem [#allocation5], %s1466_s10 }
  0x23   : > { %s258_s25 = sshll.u32 %s249_s17, 4  ;;  %s1489_s27 = scalar_lea.sflag [#allocation6], %s245_s13  ;;  %s1486_s25 = int_to_ptr.vmem [resolvable:$true] %s258_s25 }
  0x24   : > { %p1495_p4 = pneg %p1473_p0 }
  0x28   : > { %s1482_s16 = scalar_lea.hbm %s1985_s1, %s1469_s11  ;;  %s1118_s17 = scalar_lea.hbm %s1985_s1, 2048 }
  0x29   : > { %s1113_s28 = scalar_lea.hbm %s1482_s16, 1024  ;;  %p1119_p7 = scmp.lt.u32.totalorder %s1482_s16, %s1985_s1 }
  0x2a   : > { %p1114_p3 = scmp.ne.s32.totalorder %s1482_s16, %s1113_s28  ;;  %p1120_p10 = scmp.lt.u32.totalorder %s1118_s17, %s1113_s28 }
  0x2b   : > { %p1122_p12 = scmp.lt.u32.totalorder %s1113_s28, %s1482_s16 }
  0x2c   : > { %p1116_p5 = pnand %p1495_p4, %p1114_p3  ;;  %p1121_p13 = por %p1120_p10, %p1119_p7 }
  0x2e   : > { %p1117_p6 = pneg %p1116_p5  ;;  %p1123_p1 = por %p1122_p12, %p1121_p13 }
  0x30   : > { %p1124_p2 = pnand %p1123_p1, %p1117_p6 }
  0x32   : > { %1127 = shalt.err (!%p1124_p2)
}
  0x33   : > { %s1128_s13 = scalar_lea.vmem %s1486_s25, 1024  ;;  %s1357_s14 = smov [#allocation5]  }
  0x34   : > { %p1129_p3 = scmp.ne.s32.totalorder %s1486_s25, %s1128_s13  ;;  %s1133_s15 = sshll.u32 %s1357_s14, 4  ;;  %s1134_s15 = int_to_ptr.vmem [resolvable:$false] %s1133_s15 }
  0x35   : > { %s1135_s22 = scalar_lea.vmem %s1134_s15, 2048  ;;  %p1136_p9 = scmp.lt.s32.totalorder %s1486_s25, %s1134_s15 }
  0x36   : > { %p1131_p5 = pnand %p1129_p3, %p1495_p4  ;;  %p1137_p8 = scmp.lt.s32.totalorder %s1135_s22, %s1128_s13 }
  0x38   : > { %p1132_p11 = pneg %p1131_p5  ;;  %p1138_p7 = por %p1137_p8, %p1136_p9 }
  0x3a   : > { %p1139_p10 = pnand %p1138_p7, %p1132_p11 }
  0x3c   : > { %1142 = shalt.err (!%p1139_p10)
}
  0x3d   : > { %1048 = dma.hbm_to_vmem [thread:$0]  (!%p1473_p0), %s1482_s16, 1024, %s1486_s25, %s1489_s27  }
  0x3e   : > { %p1987_p12 = scmp.lt.s32.totalorder %s1355_s23, 3  ;;  %p1988_p1 = scmp.ge.s32.totalorder %s1355_s23, 1 }
  0x3f   : > { %s1531_s13 = scalar_lea.hbm %s1957_s0, %s1469_s11  ;;  %s229_s14 = scalar_lea.vmem [#allocation2], %s1466_s10 }
  0x40   : > { %p1523_p2 = pnand %p1988_p1, %p1987_p12  ;;  %s238_s15 = sshll.u32 %s229_s14, 4  ;;  %s1534_s15 = int_to_ptr.vmem [resolvable:$true] %s238_s15 }
  0x41   : > { %s1540_s22 = scalar_lea.hbm %s1959_s2, %s1469_s11  ;;  %s226_s1 = scalar_lea.sflag [#allocation3], %s1463_s9 }
  0x42   : > { %s1989_s26 = scalar_select %p1523_p2, 1, 0 }
  0x43   : > { %s1143_s7 = scalar_lea.hbm %s1531_s13, 1024  ;;  %s1148_s20 = scalar_lea.hbm %s1957_s0, 2048 }
  0x44   : > { %p1144_p8 = scmp.ne.s32.totalorder %s1531_s13, %s1143_s7  ;;  %p1149_p6 = scmp.lt.u32.totalorder %s1531_s13, %s1957_s0 }
  0x45   : > { %p1150_p13 = scmp.lt.u32.totalorder %s1148_s20, %s1143_s7  ;;  %p1152_p5 = scmp.lt.u32.totalorder %s1143_s7, %s1531_s13 }
  0x46   : > { %p1146_p9 = pnand %p1144_p8, %p1495_p4 }
  0x47   : > { %p1151_p3 = por %p1150_p13, %p1149_p6 }
  0x48   : > { %p1147_p11 = pneg %p1146_p9 }
  0x49   : > { %p1153_p7 = por %p1152_p5, %p1151_p3 }
  0x4b   : > { %p1154_p10 = pnand %p1153_p7, %p1147_p11 }
  0x4d   : > { %1157 = shalt.err (!%p1154_p10)
}
  0x4e   : > { %s1158_s14 = scalar_lea.vmem %s1534_s15, 1024  ;;  %s1358_s16 = smov [#allocation2]  }
  0x4f   : > { %p1159_p12 = scmp.ne.s32.totalorder %s1534_s15, %s1158_s14  ;;  %s1163_s25 = sshll.u32 %s1358_s16, 4  ;;  %s1164_s25 = int_to_ptr.vmem [resolvable:$false] %s1163_s25 }
  0x50   : > { %s1165_s23 = scalar_lea.vmem %s1164_s25, 2048  ;;  %p1166_p9 = scmp.lt.s32.totalorder %s1534_s15, %s1164_s25 }
  0x51   : > { %p1161_p1 = pnand %p1159_p12, %p1495_p4  ;;  %p1167_p2 = scmp.lt.s32.totalorder %s1165_s23, %s1158_s14 }
  0x53   : > { %p1162_p8 = pneg %p1161_p1  ;;  %p1168_p6 = por %p1167_p2, %p1166_p9 }
  0x55   : > { %p1169_p13 = pnand %p1168_p6, %p1162_p8 }
  0x57   : > { %1172 = shalt.err (!%p1169_p13)
}
  0x58   : > { %1045 = dma.hbm_to_vmem [thread:$0]  (!%p1473_p0), %s1531_s13, 1024, %s1534_s15, %s226_s1  }
  0x59   : > { %s269_s20 = scalar_lea.vmem [#allocation7], %s1466_s10  ;;  %s1173_s8 = scalar_lea.hbm %s1540_s22, 1024 }
  0x5a   : > { %s278_s7 = sshll.u32 %s269_s20, 4  ;;  %p1174_p11 = scmp.ne.s32.totalorder %s1540_s22, %s1173_s8  ;;  %s279_s7 = int_to_ptr.vmem [resolvable:$true] %s278_s7 }
  0x5b   : > { %s1178_s14 = scalar_lea.hbm %s1959_s2, 2048  ;;  %p1179_p5 = scmp.lt.u32.totalorder %s1540_s22, %s1959_s2 }
  0x5c   : > { %p1176_p2 = pnand %p1174_p11, %p1495_p4  ;;  %p1180_p7 = scmp.lt.u32.totalorder %s1178_s14, %s1173_s8 }
  0x5d   : > { %p1182_p12 = scmp.lt.u32.totalorder %s1173_s8, %s1540_s22 }
  0x5e   : > { %p1177_p3 = pneg %p1176_p2  ;;  %p1181_p10 = por %p1180_p7, %p1179_p5 }
  0x60   : > { %p1183_p1 = por %p1182_p12, %p1181_p10 }
  0x62   : > { %p1184_p8 = pnand %p1183_p1, %p1177_p3 }
  0x64   : > { %1187 = shalt.err (!%p1184_p8)
}
  0x65   : > { %s1188_s1 = scalar_lea.vmem %s279_s7, 1024  ;;  %s1359_s13 = smov [#allocation7]  }
  0x66   : > { %p1189_p9 = scmp.ne.s32.totalorder %s279_s7, %s1188_s1  ;;  %s1193_s15 = sshll.u32 %s1359_s13, 4  ;;  %s1194_s15 = int_to_ptr.vmem [resolvable:$false] %s1193_s15 }
  0x67   : > { %s1195_s23 = scalar_lea.vmem %s1194_s15, 2048  ;;  %p1196_p11 = scmp.lt.s32.totalorder %s279_s7, %s1194_s15 }
  0x68   : > { %p1191_p6 = pnand %p1189_p9, %p1495_p4  ;;  %p1197_p2 = scmp.lt.s32.totalorder %s1195_s23, %s1188_s1 }
  0x6a   : > { %p1192_p13 = pneg %p1191_p6  ;;  %p1198_p0 = por %p1197_p2, %p1196_p11 }
  0x6c   : > { %p1199_p5 = pnand %p1198_p0, %p1192_p13 }
  0x6e   : > { %1202 = shalt.err (!%p1199_p5)
}
  0x6f   : > { %p1990_p7 = scmp.ne.s32.totalorder %s1984_s12, 0  ;;  %s1587_s28 = scalar_lea.hbm %s1960_s3, %s1469_s11 }
  0x70   : > { %s289_s17 = scalar_lea.vmem [#allocation8], %s1466_s10  ;;  %s286_s16 = scalar_lea.sflag [#allocation9], %s1463_s9 }
  0x71   : > { %1051 = dma.hbm_to_vmem [thread:$0]  (!%p1990_p7), %s1540_s22, 1024, %s279_s7, %s1489_s27  }
  0x72   : > { %s298_s14 = sshll.u32 %s289_s17, 4  ;;  %s1203_s25 = scalar_lea.hbm %s1587_s28, 1024  ;;  %s299_s14 = int_to_ptr.vmem [resolvable:$true] %s298_s14 }
  0x73   : > { %p1204_p0 = scmp.ne.s32.totalorder %s1587_s28, %s1203_s25  ;;  %s1208_s22 = scalar_lea.hbm %s1960_s3, 2048 }
  0x74   : > { %p1209_p12 = scmp.lt.u32.totalorder %s1587_s28, %s1960_s3  ;;  %p1210_p1 = scmp.lt.u32.totalorder %s1208_s22, %s1203_s25 }
  0x75   : > { %p1206_p3 = pnand %p1204_p0, %p1495_p4  ;;  %p1212_p9 = scmp.lt.u32.totalorder %s1203_s25, %s1587_s28 }
  0x76   : > { %p1211_p8 = por %p1210_p1, %p1209_p12 }
  0x77   : > { %p1207_p10 = pneg %p1206_p3 }
  0x78   : > { %p1213_p6 = por %p1212_p9, %p1211_p8 }
  0x7a   : > { %p1214_p13 = pnand %p1213_p6, %p1207_p10 }
  0x7c   : > { %1217 = shalt.err (!%p1214_p13)
}
  0x7d   : > { %s1218_s9 = scalar_lea.vmem %s299_s14, 1024  ;;  %s1360_s10 = smov [#allocation8]  }
  0x7e   : > { %p1219_p11 = scmp.ne.s32.totalorder %s299_s14, %s1218_s9  ;;  %s1223_s13 = sshll.u32 %s1360_s10, 4  ;;  %s1224_s13 = int_to_ptr.vmem [resolvable:$false] %s1223_s13 }
  0x7f   : > { %s1225_s15 = scalar_lea.vmem %s1224_s13, 2048  ;;  %p1226_p0 = scmp.lt.s32.totalorder %s299_s14, %s1224_s13 }
  0x80   : > { %p1221_p2 = pnand %p1219_p11, %p1495_p4  ;;  %p1227_p3 = scmp.lt.s32.totalorder %s1225_s15, %s1218_s9 }
  0x82   : > { %p1222_p5 = pneg %p1221_p2  ;;  %p1228_p7 = por %p1227_p3, %p1226_p0 }
  0x84   : > { %p1229_p1 = pnand %p1228_p7, %p1222_p5 }
  0x86   : > { %1232 = shalt.err (!%p1229_p1)
}
  0x87   : > { %p1991_p12 = scmp.ne.s32.totalorder %s1984_s12, 0  ;;  %p1992_p10 = scmp.ne.s32.totalorder %s1989_s26, 0 }
  0x88   : > { %s1611_s29 = sand.u32 (!%p1992_p10), 1, %s1339_s19   ;;  %p1993_p4 = scmp.ne.s32.totalorder (!%p1992_p10), %s1979_s30, 0 }
  0x89   : > { %1054 = dma.hbm_to_vmem [thread:$0]  (!%p1991_p12), %s1587_s28, 1024, %s299_s14, %s286_s16  }
  0x8a   : > { %307 = sbr.rel (%p1992_p10) target bundleno = 250 (0xfa), region = 36  ;;  %s1614_s23 = sshll.u32 (!%p1992_p10), %s1611_s29, 6 }
  0x8b   : > { %s310_s20 = scalar_lea.sflag (!%p1992_p10), [#allocation3], %s1611_s29  ;;  %s1618_s8 = scalar_lea.vmem (!%p1992_p10), [#allocation2], %s1614_s23 }
  0x91   : > { %1314 = dma.done.wait (%p1993_p4), %s310_s20, 1024  }
  0x92   : > { %1316 = vsyncadd (%p1993_p4), %s310_s20, 4294966272  ;;  %s318_s12 = sand.u32 1, %s1425_s24   ;;  %s1626_s28 = scalar_lea.vmem [#allocation5], %s1614_s23 }
  0x93   : > { %s319_s26 = scalar_lea.sflag [#allocation6], %s318_s12 }
  0x94   : > { %1318 = dma.done.wait (%p1993_p4), %s319_s26, 2048  }
  0x95   : > { %1320 = vsyncadd (%p1993_p4), %s319_s26, 4294965248  ;;  %s1633_s17 = scalar_lea.vmem [#allocation7], %s1614_s23  ;;  %s337_s14 = scalar_lea.sflag [#allocation9], %s1611_s29 }
  0x96   : > { %s1637_s16 = scalar_lea.vmem [#allocation8], %s1614_s23 }
  0x97   : > { %1322 = dma.done.wait (%p1993_p4), %s337_s14, 1024  }
  0x98   : > { %1324 = vsyncadd (%p1993_p4), %s337_s14, 4294966272  ;;  %v1644_v0 = vld [vmem:[%s1618_s8] sm:$0xff]  ;;  %v1652_v6 = vld [vmem:[%s1618_s8 + $0x8] sm:$0xff]  ;;  %s1726_s24 = scalar_lea.vmem [#allocation10], %s1614_s23  ;;  %s386_s30 = scalar_lea.vmem [#allocation11], %s1614_s23 }
  0x99   : > { %v427_v1 = vld [vmem:[%s1626_s28] sm:$0xff]  ;;  %v428_v7 = vld [vmem:[%s1626_s28 + $0x8] sm:$0xff]  ;;  %v1678_v32 = vld [vmem:[%s1618_s8 + $0x10] sm:$0xff]  ;;  %vm419_vm4 = vcmp.gt.f32.partialorder %v1644_v0, 0.0  ;;  %vm420_vm5 = vcmp.gt.f32.partialorder %v1652_v6, 0.0  ;;  %s1028_s25 = sshll.u32 %s1347_s21, 10 }
  0x9a   : > { %v507_v2 = vld [vmem:[%s1633_s17] sm:$0xff]  ;;  %v435_v3 = vsub.f32 %v427_v1, %v1644_v0  ;;  %v436_v9 = vsub.f32 %v428_v7, %v1652_v6  ;;  %v508_v22 = vld [vmem:[%s1633_s17 + $0x8] sm:$0xff]  ;;  %v429_v33 = vld [vmem:[%s1626_s28 + $0x10] sm:$0xff]  ;;  %v1361_v1 = vmov 0.0   ;;  %vm421_vm9 = vcmp.gt.f32.partialorder %v1678_v32, 0.0  ;;  %s781_s1 = sshll.u32 %s386_s30, 4  ;;  %s1876_s21 = scalar_lea.hbm %s1962_s5, %s1028_s25  ;;  %s1878_s1 = int_to_ptr.vmem [resolvable:$true] %s781_s1 }
  0x9b   : > { %v515_v4 = vsub.f32 %v507_v2, %v1644_v0  ;;  %v587_v5 = vld [vmem:[%s1637_s16] sm:$0xff]  ;;  %v588_v27 = vld [vmem:[%s1637_s16 + $0x8] sm:$0xff]  ;;  %v516_v37 = vsub.f32 %v508_v22, %v1652_v6  ;;  %v437_v44 = vsub.f32 %v429_v33, %v1678_v32  ;;  %v509_v53 = vld [vmem:[%s1633_s17 + $0x10] sm:$0xff]  ;;  %v1711_v2 = vsel %vm419_vm4, 1.0, %v1361_v1  ;;  %s767_s27 = sshll.u32 %s1726_s24, 4  ;;  %s1885_s10 = scalar_lea.hbm %s1961_s4, %s1028_s25  ;;  %s1887_s27 = int_to_ptr.vmem [resolvable:$true] %s767_s27 }
  0x9c   : > { %v595_v8 = vsub.f32 %v587_v5, %v1644_v0  ;;  %v443_v10 = vand.u32 2147483647, %v435_v3  ;;  %v459_v11 = vmul.f32 0.5, %v435_v3  ;;  %v444_v16 = vand.u32 2147483647, %v436_v9  ;;  %v589_v58 = vld [vmem:[%s1637_s16 + $0x10] sm:$0xff]  ;;  %739 = vst [vmem:[%s386_s30] sm:$0xff] %v1711_v2 }
  0x9d   : > { %v523_v12 = vand.u32 2147483647, %v515_v4  ;;  %v539_v13 = vmul.f32 0.5, %v515_v4  ;;  %v460_v17 = vmul.f32 0.5, %v436_v9  ;;  %v596_v40 = vsub.f32 %v588_v27, %v1652_v6  ;;  %v1705_v62 = vld [vmem:[%s1618_s8 + $0x18] sm:$0xff]  ;;  %v432_v5 = vld [vmem:[%s1626_s28 + $0x28] sm:$0xff] }
  0x9e   : > { %v603_v14 = vand.u32 2147483647, %v595_v8  ;;  %v619_v15 = vmul.f32 0.5, %v595_v8  ;;  %vm1657_vm0 = vcmp.lt.f32.partialorder %v443_v10, 1.0  ;;  %v467_v19 = vmul.f32 %v459_v11, %v435_v3  ;;  %v430_v63 = vld [vmem:[%s1626_s28 + $0x18] sm:$0xff]  ;;  %s753_s13 = scalar_lea.sflag [#allocation12], %s1611_s29 }
  0x9f   : > { %v984_v20 = vadd.f32 -0.5, %v443_v10  ;;  %vm1661_vm1 = vcmp.lt.f32.partialorder %v523_v12, 1.0  ;;  %v547_v23 = vmul.f32 %v539_v13, %v515_v4  ;;  %v992_v24 = vadd.f32 -0.5, %v523_v12  ;;  %v590_v27 = vld [vmem:[%s1637_s16 + $0x18] sm:$0xff]  ;;  %s1233_s15 = scalar_lea.vmem %s1878_s1, 1024  ;;  %p2026_p8 = scmp.ne.s32.totalorder %s1980_s6, 0 }
  0xa0   : > { %vm1666_vm2 = vcmp.lt.f32.partialorder %v603_v14, 1.0  ;;  %v627_v26 = vmul.f32 %v619_v15, %v595_v8  ;;  %v1000_v29 = vadd.f32 -0.5, %v603_v14  ;;  %vm1673_vm3 = vcmp.lt.f32.partialorder %v444_v16, 1.0  ;;  %v510_v8 = vld [vmem:[%s1633_s17 + $0x18] sm:$0xff]  ;;  %p1234_p7 = scmp.ne.s32.totalorder %s1878_s1, %s1233_s15  ;;  %s1362_s23 = smov [#allocation11]  }
  0xa1   : > { %v483_v28 = vsel %vm1657_vm0, %v467_v19, %v984_v20  ;;  %v468_v31 = vmul.f32 %v460_v17, %v436_v9  ;;  %v563_v35 = vsel %vm1661_vm1, %v547_v23, %v992_v24  ;;  %v985_v36 = vadd.f32 -0.5, %v444_v16  ;;  %v592_v24 = vld [vmem:[%s1637_s16 + $0x28] sm:$0xff]  ;;  %s1237_s20 = sshll.u32 %s1362_s23, 4  ;;  %s1238_s20 = int_to_ptr.vmem [resolvable:$false] %s1237_s20 }
  0xa2   : > { %v491_v34 = vmul.f32 0.33333334, %v483_v28  ;;  %v571_v38 = vmul.f32 0.6666667, %v563_v35  ;;  %v643_v39 = vsel %vm1666_vm2, %v627_v26, %v1000_v29  ;;  %v524_v42 = vand.u32 2147483647, %v516_v37  ;;  %p1235_p9 = pnand %p1234_p7, %p2026_p8  ;;  %p1240_p13 = scmp.lt.s32.totalorder %s1878_s1, %s1238_s20 }
  0xa3   : > { %v484_v41 = vsel %vm1673_vm3, %v468_v31, %v985_v36  ;;  %v540_v43 = vmul.f32 0.5, %v516_v37  ;;  %v604_v47 = vand.u32 2147483647, %v596_v40  ;;  %v620_v48 = vmul.f32 0.5, %v596_v40  ;;  %v1749_v36 = vld [vmem:[%s1618_s8 + $0x20] sm:$0xff] }
  0xa4   : > { %v579_v45 = vadd.f32 %v571_v38, %v491_v34  ;;  %v492_v46 = vmul.f32 0.33333334, %v484_v41  ;;  %vm1692_vm6 = vcmp.lt.f32.partialorder %v524_v42, 1.0  ;;  %v993_v51 = vadd.f32 -0.5, %v524_v42  ;;  %p1236_p6 = pneg %p1235_p9 }
  0xa5   : > { %v548_v50 = vmul.f32 %v540_v43, %v516_v37  ;;  %v445_v52 = vand.u32 2147483647, %v437_v44  ;;  %vm1697_vm7 = vcmp.lt.f32.partialorder %v604_v47, 1.0  ;;  %v628_v56 = vmul.f32 %v620_v48, %v596_v40  ;;  %v431_v37 = vld [vmem:[%s1626_s28 + $0x20] sm:$0xff] }
  0xa6   : > { %v651_v54 = vadd.f32 %v643_v39, %v579_v45  ;;  %v1001_v57 = vadd.f32 -0.5, %v604_v47  ;;  %v461_v60 = vmul.f32 0.5, %v437_v44  ;;  %v517_v7 = vsub.f32 %v509_v53, %v1678_v32  ;;  %v511_v47 = vld [vmem:[%s1633_s17 + $0x20] sm:$0xff] }
  0xa7   : > { %v564_v59 = vsel %vm1692_vm6, %v548_v50, %v993_v51  ;;  %v986_v61 = vadd.f32 -0.5, %v445_v52  ;;  %vm1715_vm8 = vcmp.lt.f32.partialorder %v445_v52, 1.0  ;;  %v597_v11 = vsub.f32 %v589_v58, %v1678_v32 }
  0xa8   : > { %v659_v3 = vsel %vm419_vm4, %v651_v54, 0.0  ;;  %v572_v4 = vmul.f32 0.6666667, %v564_v59  ;;  %v644_v9 = vsel %vm1697_vm7, %v628_v56, %v1001_v57  ;;  %v469_v10 = vmul.f32 %v461_v60, %v437_v44  ;;  %v591_v59 = vld [vmem:[%s1637_s16 + $0x20] sm:$0xff] }
  0xa9   : > { %v525_v13 = vand.u32 2147483647, %v517_v7  ;;  %v541_v14 = vmul.f32 0.5, %v517_v7  ;;  %v438_v0 = vsub.f32 %v430_v63, %v1705_v62  ;;  %715 = vst [vmem:[%s1726_s24] sm:$0xff] %v659_v3  ;;  %v605_v16 = vand.u32 2147483647, %v597_v11  ;;  %v434_v63 = vld [vmem:[%s1626_s28 + $0x38] sm:$0xff] }
  0xaa   : > { %v580_v12 = vadd.f32 %v572_v4, %v492_v46  ;;  %v485_v15 = vsel %vm1715_vm8, %v469_v10, %v986_v61  ;;  %v621_v17 = vmul.f32 0.5, %v597_v11  ;;  %v518_v18 = vsub.f32 %v510_v8, %v1705_v62  ;;  %v1766_v4 = vld [vmem:[%s1618_s8 + $0x28] sm:$0xff] }
  0xab   : > { %v493_v20 = vmul.f32 0.33333334, %v485_v15  ;;  %vm1733_vm10 = vcmp.lt.f32.partialorder %v525_v13, 1.0  ;;  %v549_v22 = vmul.f32 %v541_v14, %v517_v7  ;;  %v994_v23 = vadd.f32 -0.5, %v525_v13 }
  0xac   : > { %v652_v19 = vadd.f32 %v644_v9, %v580_v12  ;;  %vm1737_vm11 = vcmp.lt.f32.partialorder %v605_v16, 1.0  ;;  %v629_v25 = vmul.f32 %v621_v17, %v597_v11  ;;  %v1002_v26 = vadd.f32 -0.5, %v605_v16  ;;  %v512_v16 = vld [vmem:[%s1633_s17 + $0x28] sm:$0xff] }
  0xad   : > { %v446_v29 = vand.u32 2147483647, %v438_v0  ;;  %v462_v30 = vmul.f32 0.5, %v438_v0  ;;  %v526_v31 = vand.u32 2147483647, %v518_v18  ;;  %v565_v33 = vsel %vm1733_vm10, %v549_v22, %v994_v23 }
  0xae   : > { %v660_v28 = vsel %vm420_vm5, %v652_v19, 0.0  ;;  %v645_v34 = vsel %vm1737_vm11, %v629_v25, %v1002_v26  ;;  %v542_v35 = vmul.f32 0.5, %v518_v18  ;;  %v573_v38 = vmul.f32 0.6666667, %v565_v33  ;;  %v594_v26 = vld [vmem:[%s1637_s16 + $0x38] sm:$0xff] }
  0xaf   : > { %vm454_vm12 = vcmp.lt.f32.partialorder %v446_v29, 1.0  ;;  %v470_v39 = vmul.f32 %v462_v30, %v438_v0  ;;  %v987_v40 = vadd.f32 -0.5, %v446_v29  ;;  %716 = vst [vmem:[%s1726_s24 + $0x8] sm:$0xff] %v660_v28  ;;  %vm534_vm13 = vcmp.lt.f32.partialorder %v526_v31, 1.0  ;;  %v1791_v29 = vld [vmem:[%s1618_s8 + $0x30] sm:$0xff] }
  0xb0   : > { %v550_v41 = vmul.f32 %v542_v35, %v518_v18  ;;  %v995_v42 = vadd.f32 -0.5, %v526_v31  ;;  %v598_v43 = vsub.f32 %v590_v27, %v1705_v62  ;;  %v581_v44 = vadd.f32 %v573_v38, %v493_v20  ;;  %v433_v30 = vld [vmem:[%s1626_s28 + $0x30] sm:$0xff] }
  0xb1   : > { %vm422_vm14 = vcmp.gt.f32.partialorder %v1705_v62, 0.0  ;;  %v486_v45 = vsel %vm454_vm12, %v470_v39, %v987_v40  ;;  %v439_v46 = vsub.f32 %v431_v37, %v1749_v36  ;;  %v519_v58 = vsub.f32 %v511_v47, %v1749_v36 }
  0xb2   : > { %v494_v48 = vmul.f32 0.33333334, %v486_v45  ;;  %v566_v49 = vsel %vm534_vm13, %v550_v41, %v995_v42  ;;  %v606_v50 = vand.u32 2147483647, %v598_v43  ;;  %v622_v51 = vmul.f32 0.5, %v598_v43 }
  0xb3   : > { %v653_v52 = vadd.f32 %v645_v34, %v581_v44  ;;  %v574_v53 = vmul.f32 0.6666667, %v566_v49  ;;  %v447_v54 = vand.u32 2147483647, %v439_v46  ;;  %v463_v55 = vmul.f32 0.5, %v439_v46  ;;  %v513_v44 = vld [vmem:[%s1633_s17 + $0x30] sm:$0xff] }
  0xb4   : > { %vm614_vm15 = vcmp.lt.f32.partialorder %v606_v50, 1.0  ;;  %v630_v56 = vmul.f32 %v622_v51, %v598_v43  ;;  %v1003_v57 = vadd.f32 -0.5, %v606_v50  ;;  %v527_v9 = vand.u32 2147483647, %v519_v58 }
  0xb5   : > { %v661_v60 = vsel %vm421_vm9, %v653_v52, 0.0  ;;  %v582_v61 = vadd.f32 %v574_v53, %v494_v48  ;;  %vm1761_vm0 = vcmp.lt.f32.partialorder %v447_v54, 1.0  ;;  %v471_v3 = vmul.f32 %v463_v55, %v439_v46 }
  0xb6   : > { %v646_v7 = vsel %vm614_vm15, %v630_v56, %v1003_v57  ;;  %v988_v8 = vadd.f32 -0.5, %v447_v54  ;;  %vm423_vm1 = vcmp.gt.f32.partialorder %v1749_v36, 0.0  ;;  %v543_v11 = vmul.f32 0.5, %v519_v58  ;;  %717 = vst [vmem:[%s1726_s24 + $0x10] sm:$0xff] %v661_v60  ;;  %v593_v56 = vld [vmem:[%s1637_s16 + $0x30] sm:$0xff] }
  0xb7   : > { %v654_v10 = vadd.f32 %v646_v7, %v582_v61  ;;  %v599_v12 = vsub.f32 %v591_v59, %v1749_v36  ;;  %vm1774_vm2 = vcmp.lt.f32.partialorder %v527_v9, 1.0  ;;  %v996_v0 = vadd.f32 -0.5, %v527_v9  ;;  %v1816_v61 = vld [vmem:[%s1618_s8 + $0x38] sm:$0xff]  ;;  %s1239_s8 = scalar_lea.vmem %s1238_s20, 2048 }
  0xb8   : > { %v487_v13 = vsel %vm1761_vm0, %v471_v3, %v988_v8  ;;  %v440_v15 = vsub.f32 %v432_v5, %v1766_v4  ;;  %v551_v19 = vmul.f32 %v543_v11, %v519_v58  ;;  %v520_v28 = vsub.f32 %v512_v16, %v1766_v4  ;;  %p1241_p11 = scmp.lt.s32.totalorder %s1239_s8, %s1233_s15 }
  0xb9   : > { %v662_v17 = vsel %vm422_vm14, %v654_v10, 0.0  ;;  %v495_v18 = vmul.f32 0.33333334, %v487_v13  ;;  %v607_v20 = vand.u32 2147483647, %v599_v12  ;;  %v623_v21 = vmul.f32 0.5, %v599_v12 }
  0xba   : > { %v448_v22 = vand.u32 2147483647, %v440_v15  ;;  %v464_v23 = vmul.f32 0.5, %v440_v15  ;;  %v567_v25 = vsel %vm1774_vm2, %v551_v19, %v996_v0  ;;  %718 = vst [vmem:[%s1726_s24 + $0x18] sm:$0xff] %v662_v17  ;;  %v528_v38 = vand.u32 2147483647, %v520_v28  ;;  %p1242_p2 = por %p1241_p11, %p1240_p13 }
  0xbb   : > { %vm1785_vm3 = vcmp.lt.f32.partialorder %v607_v20, 1.0  ;;  %v1004_v27 = vadd.f32 -0.5, %v607_v20  ;;  %v575_v31 = vmul.f32 0.6666667, %v567_v25  ;;  %v631_v33 = vmul.f32 %v623_v21, %v599_v12  ;;  %v514_v0 = vld [vmem:[%s1633_s17 + $0x38] sm:$0xff] }
  0xbc   : > { %vm1795_vm4 = vcmp.lt.f32.partialorder %v448_v22, 1.0  ;;  %v472_v35 = vmul.f32 %v464_v23, %v440_v15  ;;  %v989_v37 = vadd.f32 -0.5, %v448_v22  ;;  %v544_v39 = vmul.f32 0.5, %v520_v28  ;;  %p1243_p5 = pnand %p1242_p2, %p1236_p6 }
  0xbd   : > { %v600_v40 = vsub.f32 %v592_v24, %v1766_v4  ;;  %v583_v41 = vadd.f32 %v575_v31, %v495_v18  ;;  %v647_v42 = vsel %vm1785_vm3, %v631_v33, %v1004_v27  ;;  %vm424_vm6 = vcmp.gt.f32.partialorder %v1766_v4, 0.0 }
  0xbe   : > { %v441_v43 = vsub.f32 %v433_v30, %v1791_v29  ;;  %v488_v45 = vsel %vm1795_vm4, %v472_v35, %v989_v37  ;;  %vm536_vm7 = vcmp.lt.f32.partialorder %v528_v38, 1.0  ;;  %v552_v46 = vmul.f32 %v544_v39, %v520_v28 }
  0xbf   : > { %v997_v47 = vadd.f32 -0.5, %v528_v38  ;;  %v655_v48 = vadd.f32 %v647_v42, %v583_v41  ;;  %v496_v49 = vmul.f32 0.33333334, %v488_v45  ;;  %v608_v50 = vand.u32 2147483647, %v600_v40 }
  0xc0   : > { %v624_v51 = vmul.f32 0.5, %v600_v40  ;;  %v449_v53 = vand.u32 2147483647, %v441_v43  ;;  %v465_v54 = vmul.f32 0.5, %v441_v43  ;;  %v521_v55 = vsub.f32 %v513_v44, %v1791_v29 }
  0xc1   : > { %v568_v52 = vsel %vm536_vm7, %v552_v46, %v997_v47  ;;  %v663_v57 = vsel %vm423_vm1, %v655_v48, 0.0  ;;  %vm1811_vm8 = vcmp.lt.f32.partialorder %v608_v50, 1.0  ;;  %v1005_v3 = vadd.f32 -0.5, %v608_v50 }
  0xc2   : > { %v576_v58 = vmul.f32 0.6666667, %v568_v52  ;;  %v632_v60 = vmul.f32 %v624_v51, %v600_v40  ;;  %vm1819_vm10 = vcmp.lt.f32.partialorder %v449_v53, 1.0  ;;  %v473_v7 = vmul.f32 %v465_v54, %v441_v43  ;;  %719 = vst [vmem:[%s1726_s24 + $0x20] sm:$0xff] %v663_v57 }
  0xc3   : > { %v990_v9 = vadd.f32 -0.5, %v449_v53  ;;  %v529_v10 = vand.u32 2147483647, %v521_v55  ;;  %v545_v11 = vmul.f32 0.5, %v521_v55  ;;  %vm425_vm11 = vcmp.gt.f32.partialorder %v1791_v29, 0.0 }
  0xc4   : > { %v584_v8 = vadd.f32 %v576_v58, %v496_v49  ;;  %v648_v12 = vsel %vm1811_vm8, %v632_v60, %v1005_v3  ;;  %v601_v13 = vsub.f32 %v593_v56, %v1791_v29  ;;  %v442_v14 = vsub.f32 %v434_v63, %v1816_v61 }
  0xc5   : > { %v489_v16 = vsel %vm1819_vm10, %v473_v7, %v990_v9  ;;  %vm537_vm12 = vcmp.lt.f32.partialorder %v529_v10, 1.0  ;;  %v553_v17 = vmul.f32 %v545_v11, %v521_v55  ;;  %v998_v19 = vadd.f32 -0.5, %v529_v10 }
  0xc6   : > { %v656_v15 = vadd.f32 %v648_v12, %v584_v8  ;;  %v497_v18 = vmul.f32 0.33333334, %v489_v16  ;;  %v609_v20 = vand.u32 2147483647, %v601_v13  ;;  %v625_v21 = vmul.f32 0.5, %v601_v13 }
  0xc7   : > { %v450_v23 = vand.u32 2147483647, %v442_v14  ;;  %v466_v24 = vmul.f32 0.5, %v442_v14  ;;  %v522_v25 = vsub.f32 %v514_v0, %v1816_v61  ;;  %v569_v27 = vsel %vm537_vm12, %v553_v17, %v998_v19 }
  0xc8   : > { %v664_v22 = vsel %vm424_vm6, %v656_v15, 0.0  ;;  %vm1836_vm13 = vcmp.lt.f32.partialorder %v609_v20, 1.0  ;;  %v633_v30 = vmul.f32 %v625_v21, %v601_v13  ;;  %vm426_vm15 = vcmp.gt.f32.partialorder %v1816_v61, 0.0 }
  0xc9   : > { %v577_v31 = vmul.f32 0.6666667, %v569_v27  ;;  %v1006_v33 = vadd.f32 -0.5, %v609_v20  ;;  %vm458_vm0 = vcmp.lt.f32.partialorder %v450_v23, 1.0  ;;  %v474_v34 = vmul.f32 %v466_v24, %v442_v14  ;;  %720 = vst [vmem:[%s1726_s24 + $0x28] sm:$0xff] %v664_v22 }
  0xca   : > { %v991_v35 = vadd.f32 -0.5, %v450_v23  ;;  %v530_v37 = vand.u32 2147483647, %v522_v25  ;;  %v546_v38 = vmul.f32 0.5, %v522_v25  ;;  %v602_v39 = vsub.f32 %v594_v26, %v1816_v61 }
  0xcb   : > { %v585_v40 = vadd.f32 %v577_v31, %v497_v18  ;;  %v649_v41 = vsel %vm1836_vm13, %v633_v30, %v1006_v33  ;;  %v1009_v42 = vsel %vm420_vm5, 1.0, %v1361_v1  ;;  %v1010_v51 = vsel %vm421_vm9, 1.0, %v1361_v1 }
  0xcc   : > { %v490_v43 = vsel %vm458_vm0, %v474_v34, %v991_v35  ;;  %vm538_vm2 = vcmp.lt.f32.partialorder %v530_v37, 1.0  ;;  %v554_v44 = vmul.f32 %v546_v38, %v522_v25  ;;  %v999_v45 = vadd.f32 -0.5, %v530_v37  ;;  %740 = vst [vmem:[%s386_s30 + $0x8] sm:$0xff] %v1009_v42  ;;  %741 = vst [vmem:[%s386_s30 + $0x10] sm:$0xff] %v1010_v51 }
  0xcd   : > { %v657_v46 = vadd.f32 %v649_v41, %v585_v40  ;;  %v498_v47 = vmul.f32 0.33333334, %v490_v43  ;;  %v610_v48 = vand.u32 2147483647, %v602_v39  ;;  %v626_v49 = vmul.f32 0.5, %v602_v39 }
  0xce   : > { %v570_v50 = vsel %vm538_vm2, %v554_v44, %v999_v45  ;;  %v1011_v6 = vsel %vm422_vm14, 1.0, %v1361_v1  ;;  %v1012_v56 = vsel %vm423_vm1, 1.0, %v1361_v1  ;;  %v1013_v32 = vsel %vm424_vm6, 1.0, %v1361_v1 }
  0xcf   : > { %v665_v52 = vsel %vm425_vm11, %v657_v46, 0.0  ;;  %v578_v53 = vmul.f32 0.6666667, %v570_v50  ;;  %vm618_vm5 = vcmp.lt.f32.partialorder %v610_v48, 1.0  ;;  %v634_v54 = vmul.f32 %v626_v49, %v602_v39  ;;  %742 = vst [vmem:[%s386_s30 + $0x18] sm:$0xff] %v1011_v6  ;;  %743 = vst [vmem:[%s386_s30 + $0x20] sm:$0xff] %v1012_v56 }
  0xd0   : > { %v1007_v55 = vadd.f32 -0.5, %v610_v48  ;;  %v1014_v62 = vsel %vm425_vm11, 1.0, %v1361_v1  ;;  %721 = vst [vmem:[%s1726_s24 + $0x30] sm:$0xff] %v665_v52  ;;  %v1015_v36 = vsel %vm426_vm15, 1.0, %v1361_v1  ;;  %744 = vst [vmem:[%s386_s30 + $0x28] sm:$0xff] %v1013_v32 }
  0xd1   : > { %v586_v2 = vadd.f32 %v578_v53, %v498_v47  ;;  %745 = vst [vmem:[%s386_s30 + $0x30] sm:$0xff] %v1014_v62  ;;  %746 = vst [vmem:[%s386_s30 + $0x38] sm:$0xff] %v1015_v36 }
  0xd2   : > { %v650_v57 = vsel %vm618_vm5, %v634_v54, %v1007_v55 }
  0xd3   : > { %v658_v58 = vadd.f32 %v650_v57, %v586_v2 }
  0xd5   : > { %v666_v4 = vsel %vm426_vm15, %v658_v58, 0.0 }
  0xd6   : > { %1246 = shalt.err (!%p1243_p5)
}
  0xd7   : > { %s1247_s12 = scalar_lea.hbm %s1876_s21, 1024  ;;  %s1251_s17 = scalar_lea.hbm %s1962_s5, 2048 }
  0xd8   : > { %p1248_p0 = scmp.ne.s32.totalorder %s1876_s21, %s1247_s12  ;;  %p1252_p12 = scmp.lt.u32.totalorder %s1876_s21, %s1962_s5 }
  0xd9   : > { %p1253_p10 = scmp.lt.u32.totalorder %s1251_s17, %s1247_s12  ;;  %p1255_p7 = scmp.lt.u32.totalorder %s1247_s12, %s1876_s21 }
  0xda   : > { %p1249_p3 = pnand %p1248_p0, %p2026_p8 }
  0xdb   : > { %p1254_p4 = por %p1253_p10, %p1252_p12 }
  0xdc   : > { %p1250_p1 = pneg %p1249_p3 }
  0xdd   : > { %p1256_p9 = por %p1255_p7, %p1254_p4 }
  0xdf   : > { %p1257_p6 = pnand %p1256_p9, %p1250_p1 }
  0xe1   : > { %1260 = shalt.err (!%p1257_p6)
}
  0xe2   : > { %1039 = dma.vmem_to_hbm [thread:$0]  (%p2026_p8), %s1878_s1, 1024, %s1876_s21, %s753_s13   ;;  %722 = vst [vmem:[%s1726_s24 + $0x38] sm:$0xff] %v666_v4 }
  0xe3   : > { %s748_s30 = scalar_lea.sflag [#allocation4], %s1611_s29  ;;  %s1261_s25 = scalar_lea.vmem %s1887_s27, 1024 }
  0xe4   : > { %p1262_p13 = scmp.ne.s32.totalorder %s1887_s27, %s1261_s25  ;;  %s1363_s22 = smov [#allocation10]  }
  0xe5   : > { %s1265_s7 = sshll.u32 %s1363_s22, 4  ;;  %s1266_s7 = int_to_ptr.vmem [resolvable:$false] %s1265_s7 }
  0xe6   : > { %p1263_p11 = pnand %p1262_p13, %p2026_p8  ;;  %s1267_s11 = scalar_lea.vmem %s1266_s7, 2048 }
  0xe7   : > { %p1268_p5 = scmp.lt.s32.totalorder %s1887_s27, %s1266_s7  ;;  %p1269_p0 = scmp.lt.s32.totalorder %s1267_s11, %s1261_s25 }
  0xe8   : > { %p1264_p2 = pneg %p1263_p11 }
  0xe9   : > { %p1270_p3 = por %p1269_p0, %p1268_p5 }
  0xeb   : > { %p1271_p1 = pnand %p1270_p3, %p1264_p2 }
  0xed   : > { %1274 = shalt.err (!%p1271_p1)
}
  0xee   : > { %s1275_s29 = scalar_lea.hbm %s1885_s10, 1024  ;;  %s1279_s21 = scalar_lea.hbm %s1961_s4, 2048 }
  0xef   : > { %p1276_p12 = scmp.ne.s32.totalorder %s1885_s10, %s1275_s29  ;;  %p1280_p7 = scmp.lt.u32.totalorder %s1885_s10, %s1961_s4 }
  0xf0   : > { %p1281_p9 = scmp.lt.u32.totalorder %s1279_s21, %s1275_s29  ;;  %p1283_p13 = scmp.lt.u32.totalorder %s1275_s29, %s1885_s10 }
  0xf1   : > { %p1277_p10 = pnand %p1276_p12, %p2026_p8 }
  0xf2   : > { %p1282_p6 = por %p1281_p9, %p1280_p7 }
  0xf3   : > { %p1278_p4 = pneg %p1277_p10 }
  0xf4   : > { %p1284_p11 = por %p1283_p13, %p1282_p6 }
  0xf6   : > { %p1285_p2 = pnand %p1284_p11, %p1278_p4 }
  0xf8   : > { %1288 = shalt.err (!%p1285_p2)
}
  0xf9   : > { %1038 = dma.vmem_to_hbm [thread:$0]  (%p2026_p8), %s1887_s27, 1024, %s1885_s10, %s748_s30  }
  0xfa PF: > { %s2027_s15 = sld [smem:[#allocation23_spill]]  ;;  %s2028_s23 = sld [smem:[#allocation20_spill]] }
  0xfb   : > { %s793_s20 = sand.u32 1, %s1335_s18  }
  0xfc   : > { %s794_s8 = scalar_lea.sflag [#allocation4], %s793_s20 }
 0x100   : > { %p2029_p5 = scmp.ne.s32.totalorder %s2027_s15, 0  ;;  %p2030_p0 = scmp.ge.s32.totalorder %s2028_s23, 2 }
 0x102   : > { %p1056_p3 = pnand %p2030_p0, %p2029_p5 }
 0x104   : > { %1326 = dma.done.wait (!%p1056_p3), %s794_s8, 1024  }
 0x105   : > { %1328 = vsyncadd (!%p1056_p3), %s794_s8, 4294966272  ;;  %s803_s12 = scalar_lea.sflag [#allocation12], %s793_s20 }
 0x106   : > { %1330 = dma.done.wait (!%p1056_p3), %s803_s12, 1024  }
 0x107   : > { %1332 = vsyncadd (!%p1056_p3), %s803_s12, 4294966272  ;;  %s31_s23 = sadd.s32 1, %s2028_s23   ;;  %s2031_s6 = sld [smem:[#allocation18_spill]] }
 0x108   : > { %p28_p1 = scmp.ge.s32.totalorder %s31_s23, 4   ;;  %s2032_s20 = sld [smem:[#allocation22_spill]] }
 0x109   : > { %s2033_s21 = sld [smem:[#allocation19_spill]]  ;;  %s2034_s22 = sld [smem:[#allocation21_spill]] }
 0x10a   : > { %s2035_s18 = smov %s1339_s19  ;;  %30 = sbr.rel (!%p28_p1) target bundleno = 14 (0xe), region = 139 }
 0x10d   : > { %s2036_s19 = smov %s2031_s6 }
 0x111   :  { %808 = vsyncpa [#allocation3], 1 }
 0x112   :  { %810 = vsyncpa [#allocation3 + $0x1], 1 }
 0x113   :  { %811 = vsyncpa [#allocation6], 1 }
 0x114   :  { %813 = vsyncpa [#allocation6 + $0x1], 1 }
 0x115   :  { %814 = vsyncpa [#allocation9], 1 }
 0x116   :  { %816 = vsyncpa [#allocation9 + $0x1], 1 }
 0x117   :  { %817 = vsyncpa [#allocation4], 1 }
 0x118   :  { %819 = vsyncpa [#allocation4 + $0x1], 1 }
 0x119   :  { %820 = vsyncpa [#allocation12], 1 }
 0x11a   :  { %822 = vsyncpa [#allocation12 + $0x1], 1 }

</bundles_post_ra>
